<compile_context>
chip_gen: v5e
topology: v5e:2x2
jax: 0.10.0
libtpu: 0.0.40
codegen_flags: <defaults>
</compile_context>

<pallas_src>
import jax
import jax.numpy as jnp
from jax.experimental import pallas as pl
from jax.experimental.pallas import tpu as pltpu


# ----- model constants (from FHN.__init__) -----------------------------------
EPI = 0.05
A_PARAM = 0.7
B_PARAM = 0.2
I_EXT = 0.0

INV_EPI = 1.0 / EPI        # multiply instead of divide
ONE_THIRD = 1.0 / 3.0

# ----- tiling policy ----------------------------------------------------------
_LANE_CANDIDATES = (1024, 512, 256, 128)
_MAX_ROW_TILE = 2048            # with cols=1024 -> 8 MiB f32 per block
_TARGET_GRID_STEPS = 4          # aim for >=4 blocks (overlap + both v7x TCs)
_VMEM_LIMIT_BYTES = 48 * 1024 * 1024
_SMALL_TOTAL = 16 * 1024        # below this, plain jnp beats a kernel launch


def _round_up(x, m):
    return ((x + m - 1) // m) * m


def _fhn_kernel(x_ref, o_ref):
    """x_ref / o_ref: (TR, C) f32 blocks whose lanes hold [v, w, v, w, ...]."""
    x = x_ref[...]
    cols = x.shape[-1]

    # Pair partner via XLU rotates (no unaligned-slice VMEM temporaries):
    #   nxt[:, i] = x[:, i+1]  -> the w sitting next to a v-lane
    #   prv[:, i] = x[:, i-1]  -> the v sitting next to a w-lane
    # Wrap-around lanes are never selected by the parity mask below.
    nxt = pltpu.roll(x, shift=cols - 1, axis=1)   # rotate left by 1
    prv = pltpu.roll(x, shift=1, axis=1)          # rotate right by 1

    lane = jax.lax.broadcasted_iota(jnp.int32, (1, cols), 1)
    is_v = (lane & 1) == 0                        # (1, C); broadcasts over rows

    # dv is only consumed on v-lanes (even), dw only on w-lanes (odd), so we
    # can use nxt / prv directly without a partner-select.
    dv = (x - (x * x * x) * ONE_THIRD - nxt + I_EXT) * INV_EPI
    dw = prv + A_PARAM - B_PARAM * x
    o_ref[...] = jnp.where(is_v, dv, dw)


def _choose_layout(total):
    """Pick a lane-dense (rows, cols) row-major view; pad if no divisor fits.

    Returns (padded_total, rows, cols).  Padding is always an even number of
    elements (total and cols are even), so lane parity == v/w parity holds in
    every row of the reshaped view.
    """
    # Prefer a divisor leaving >=16 rows so the grid splits into >=2 blocks of
    # >=8 rows (engages both v7x TensorCores, overlaps DMA with compute).
    for cols in _LANE_CANDIDATES:
        if total % cols == 0 and total // cols >= 16:
            return total, total // cols, cols
    for cols in _LANE_CANDIDATES:
        if total % cols == 0:
            return total, total // cols, cols
    # No divisor: pad the flat state to a lane-dense multiple instead of
    # falling back to a masked 2-wide layout.
    cols = 1024 if total >= _SMALL_TOTAL else 128
    padded = _round_up(total, cols)
    return padded, padded // cols, cols


def _reference_forward(state):
    """Pure-JAX reference mirroring the PyTorch strided-slice code."""
    L = 1
    v = state[:, 0:2 * L:2]
    w = state[:, 1:2 * L:2]
    dx = jnp.zeros_like(state)
    dx = dx.at[:, 0:2 * L:2].set((v - v ** 3 / 3 - w + I_EXT) / EPI)
    dx = dx.at[:, 1:2 * L:2].set(v + A_PARAM - B_PARAM * w)
    return dx


def fhn_forward(t, state):
    """Pallas implementation of FHN.forward.

    Args:
      t:     unused (kept for ODE-solver signature parity).
      state: (batch, 2) float32, interleaved [v, w] layout.
    Returns:
      dstate: (batch, 2) float32, same layout.
    """
    del t  # unused in forward()
    batch, feat = state.shape
    if feat != 2:
        raise ValueError("FHN state must have feature length 2*L with L = 1")

    total = batch * feat
    if total < _SMALL_TOTAL:
        # Launch + tile-padding overhead dominates; let XLA fuse it.
        return _reference_forward(state)

    flat = state.reshape(total)
    padded_total, rows, cols = _choose_layout(total)
    if padded_total != total:
        flat = jnp.pad(flat, (0, padded_total - total))
    x2d = flat.reshape(rows, cols)            # free row-major reshape

    # Row tile: multiple of 8, aim for >= _TARGET_GRID_STEPS blocks, capped so
    # one block is <= 8 MiB f32 (<= ~32 MiB with in+out double-buffering).
    if rows <= 8:
        tr = rows                              # single full-extent block
    else:
        tr = min(_MAX_ROW_TILE,
                 _round_up(pl.cdiv(rows, _TARGET_GRID_STEPS), 8))
    grid = (pl.cdiv(rows, tr),)

    # Partial last row-block (rows % tr != 0) computes on Pallas pad rows and
    # relies on masked writeback to discard them; rows are independent and
    # there are no reductions, so this is safe.
    out2d = pl.pallas_call(
        _fhn_kernel,
        out_shape=jax.ShapeDtypeStruct((rows, cols), state.dtype),
        grid=grid,
        in_specs=[pl.BlockSpec((tr, cols), lambda i: (i, 0))],
        out_specs=pl.BlockSpec((tr, cols), lambda i: (i, 0)),
        compiler_params=pltpu.CompilerParams(
            dimension_semantics=("parallel",),
            vmem_limit_bytes=_VMEM_LIMIT_BYTES,
        ),
        cost_estimate=pl.CostEstimate(
            flops=8 * padded_total,
            transcendentals=0,
            bytes_accessed=8 * padded_total,
        ),
    )(x2d)

    out_flat = out2d.reshape(padded_total)
    if padded_total != total:
        out_flat = out_flat[:total]
    return out_flat.reshape(batch, feat)


if __name__ == "__main__":
    key = jax.random.PRNGKey(0)
    t = 0.0

    # batch=2    : spec-sized case (early-out jnp path).
    # batch=8192 : smallest Pallas-path case (rows=16, cols=1024, grid=(2,)).
    # batch=8200 : exercises the pad-to-lane-dense + partial-block path.
    for batch in (2, 8192, 8200):
        key, sub = jax.random.split(key)
        state = jax.random.uniform(sub, (batch, 2), dtype=jnp.float32,
                                   minval=-2.0, maxval=2.0)

        dstate = jax.block_until_ready(fhn_forward(t, state))
        ref = _reference_forward(state)
        if dstate.shape != ref.shape or not jnp.allclose(
                dstate, ref, rtol=1e-5, atol=1e-5):
            raise AssertionError(
                f"Pallas kernel does not match reference for batch={batch}")

    print("KERNEL_OK")
</pallas_src>

<mosaic_0001>
module attributes {stable_mosaic.version = 11 : i64} {
  func.func @_fhn_kernel(%arg0: i32, %arg1: memref<8x1024xf32, #tpu.memory_space<vmem>>, %arg2: memref<8x1024xf32, #tpu.memory_space<vmem>>) attributes {dimension_semantics = [#tpu.dimension_semantics<parallel>], iteration_bounds = array<i64: 2>, scalar_prefetch = 0 : i64, scratch_operands = 0 : i64, tpu.core_type = #tpu.core_type<tc>, window_params = [{transform_indices = @transform_0, window_bounds = array<i64: 8, 1024>}, {transform_indices = @transform_1, window_bounds = array<i64: 8, 1024>}]} {
    %c0 = arith.constant 0 : index
    %c0_0 = arith.constant 0 : index
    %0 = vector.load %arg1[%c0, %c0_0] : memref<8x1024xf32, #tpu.memory_space<vmem>>, vector<8x1024xf32>
    %c1023_i32 = arith.constant 1023 : i32
    %1 = tpu.dynamic_rotate %0 by %c1023_i32 dim 1 : vector<8x1024xf32>, i32 -> vector<8x1024xf32>
    %c1_i32 = arith.constant 1 : i32
    %2 = tpu.dynamic_rotate %0 by %c1_i32 dim 1 : vector<8x1024xf32>, i32 -> vector<8x1024xf32>
    %3 = tpu.iota {dimensions = array<i32: 1>} : vector<1x1024xi32>
    %c1_i32_1 = arith.constant 1 : i32
    %4 = vector.broadcast %c1_i32_1 : i32 to vector<1x1024xi32>
    %5 = arith.andi %3, %4 : vector<1x1024xi32>
    %c0_i32 = arith.constant 0 : i32
    %6 = vector.broadcast %c0_i32 : i32 to vector<1x1024xi32>
    %7 = arith.cmpi eq, %5, %6 : vector<1x1024xi32>
    %8 = arith.mulf %0, %0 : vector<8x1024xf32>
    %9 = arith.mulf %8, %0 : vector<8x1024xf32>
    %cst = arith.constant 0.333333343 : f32
    %10 = vector.broadcast %cst : f32 to vector<8x1024xf32>
    %11 = arith.mulf %9, %10 : vector<8x1024xf32>
    %12 = arith.subf %0, %11 : vector<8x1024xf32>
    %13 = arith.subf %12, %1 : vector<8x1024xf32>
    %cst_2 = arith.constant 0.000000e+00 : f32
    %14 = vector.broadcast %cst_2 : f32 to vector<8x1024xf32>
    %15 = arith.addf %13, %14 : vector<8x1024xf32>
    %cst_3 = arith.constant 2.000000e+01 : f32
    %16 = vector.broadcast %cst_3 : f32 to vector<8x1024xf32>
    %17 = arith.mulf %15, %16 : vector<8x1024xf32>
    %cst_4 = arith.constant 0.699999988 : f32
    %18 = vector.broadcast %cst_4 : f32 to vector<8x1024xf32>
    %19 = arith.addf %2, %18 : vector<8x1024xf32>
    %cst_5 = arith.constant 2.000000e-01 : f32
    %20 = vector.broadcast %cst_5 : f32 to vector<8x1024xf32>
    %21 = arith.mulf %20, %0 : vector<8x1024xf32>
    %22 = arith.subf %19, %21 : vector<8x1024xf32>
    %23 = vector.shape_cast %7 : vector<1x1024xi1> to vector<1x1024xi1>
    %24 = vector.broadcast %23 : vector<1x1024xi1> to vector<8x1024xi1>
    %25 = arith.select %24, %17, %22 : vector<8x1024xi1>, vector<8x1024xf32>
    %c0_6 = arith.constant 0 : index
    %c0_7 = arith.constant 0 : index
    %26 = vector.load %arg2[%c0_6, %c0_7] : memref<8x1024xf32, #tpu.memory_space<vmem>>, vector<8x1024xf32>
    tpu.vector_store %arg2[%c0_6, %c0_7], %25 {strides = array<i32>} : memref<8x1024xf32, #tpu.memory_space<vmem>>, vector<8x1024xf32>,
    return
  }
  func.func @transform_0(%arg0: i32) -> (i32, i32) {
    %c0_i32 = arith.constant 0 : i32
    %c0_i32_0 = arith.constant 0 : i32
    return %arg0, %c0_i32 : i32, i32
  }
  func.func @transform_1(%arg0: i32) -> (i32, i32) {
    %c0_i32 = arith.constant 0 : i32
    %c0_i32_0 = arith.constant 0 : i32
    return %arg0, %c0_i32 : i32, i32
  }
}

</mosaic_0001>

<bundles_post_ra>
// kernel: tpu_custom_call.1
= control target key start
LH: loop header
LB: loop body
LE: loop exit
PB: predicated region body
PF: predicated region fallthrough
CT: control target
= control target key end

     0   :  { %6 = vsyncpa [#allocation3], 0  ;;  %s896_s0 = inlined_call_operand.hbm [shape: f32[16,1024], index: 0, kind: input, shape index: {}]   ;;  %s897_s1 = inlined_call_operand.hbm [shape: f32[16,1024], index: 1, kind: output, shape index: {}]  }
   0x1   :  { %8 = vsyncpa [#allocation3 + $0x1], 0 }
   0x2   :  { %9 = vsyncpa [#allocation4], 0 }
   0x3   :  { %11 = vsyncpa [#allocation4 + $0x1], 0  ;;  %s591_s6 = smov 0   ;;  %s593_s7 = smov 0  }
   0x4   :  { %s595_s8 = smov 0   ;;  %s597_s9 = smov 0  }
   0x5 LB: > { %s612_s10 = sadd.s32 4294967295, %s577_s9   ;;  %s417_s11 = sadd.s32 4294967294, %s577_s9   ;;  %s577_s9 = sphi %s597_s9, %s915_s9   ;;  %s573_s8 = sphi %s595_s8, %s914_s8   ;;  %s569_s7 = sphi %s593_s7, %s913_s7   ;;  %s565_s6 = sphi %s591_s6, %s912_s6  }
   0x6   : > { %s616_s12 = sadd.s32 1, %s577_s9   ;;  %s24_s13 = sadd.s32 1, %s573_s8 }
   0x7   : > { %s21_s14 = ssub.s32 %s577_s9, %s616_s12  ;;  %p31_p0 = scmp.ne.s32.totalorder %s573_s8, %s569_s7 }
   0x8   : > { %p22_p1 = scmp.eq.s32.totalorder %s21_s14, 0  ;;  %p32_p2 = scmp.eq.s32.totalorder %s577_s9, 0 }
   0x9   : > { %p37_p3 = scmp.ne.s32.totalorder %s569_s7, %s565_s6  ;;  %p38_p4 = scmp.eq.s32.totalorder %s612_s10, 0 }
   0xa   : > { %s628_s15 = scalar_select %p22_p1, %s573_s8, %s24_s13  }
   0xb   : > { %p630_p5 = por %p32_p2, %p31_p0  ;;  %p634_p6 = por %p38_p4, %p37_p3 }
   0xc   : > { %p61_p7 = scmp.eq.s32.totalorder %s612_s10, 1  ;;  %p67_p8 = scmp.eq.s32.totalorder %s417_s11, 1 }
   0xd   : > { %p445_p10 = scmp.lt.s32.totalorder %s577_s9, 2  ;;  %s87_s20 = sand.u32 1, %s573_s8  }
   0xe   : > { %p641_p11 = por %p61_p7, %p31_p0  ;;  %p645_p12 = por %p67_p8, %p37_p3 }
   0xf   : > { %s431_s21 = sshll.u32 %s577_s9, 6  ;;  %s420_s22 = sshll.u32 %s87_s20, 6 }
  0x10   : > { %s96_s25 = scalar_lea.hbm %s896_s0, %s431_s21  ;;  %s91_s27 = scalar_lea.vmem [#allocation2], %s420_s22 }
  0x11   : > { %s98_s26 = sshll.u32 %s96_s25, 4  ;;  %s100_s28 = sshll.u32 %s91_s27, 4  ;;  %s99_s26 = int_to_ptr.hbm [resolvable:$true] %s98_s26  ;;  %s101_s28 = int_to_ptr.vmem [resolvable:$true] %s100_s28 }
  0x12   : > { %p656_p13 = pnand %p445_p10, %p630_p5  ;;  %p423_p0 = scmp.ge.s32.totalorder %s577_s9, 1 }
  0x13   : > { %p105_p1 = scmp.lt.s32.totalorder %s577_s9, 3  ;;  %s88_s30 = scalar_lea.sflag [#allocation3], %s87_s20 }
  0x14   : > { %s481_s2 = sshra.s32 %s99_s26, 4  ;;  %p485_p3 = pneg %p656_p13  ;;  %s482_s2 = int_to_ptr.hbm [resolvable:$true] %s481_s2 }
  0x15   : > { %s483_s3 = scalar_lea.hbm %s482_s2, 64  ;;  %s488_s11 = scalar_lea.hbm %s896_s0, 128 }
  0x16   : > { %p484_p2 = scmp.ne.s32.totalorder %s482_s2, %s483_s3  ;;  %p489_p5 = scmp.lt.s32.totalorder %s482_s2, %s896_s0 }
  0x17   : > { %p490_p8 = scmp.lt.s32.totalorder %s488_s11, %s483_s3 }
  0x18   : > { %p486_p4 = pnand %p485_p3, %p484_p2 }
  0x19   : > { %p491_p10 = por %p490_p8, %p489_p5 }
  0x1a   : > { %p487_p7 = pneg %p486_p4 }
  0x1c   : > { %p492_p9 = pnand %p491_p10, %p487_p7 }
  0x1e   : > { %495 = shalt.err (!%p492_p9)
}
  0x1f   : > { %440 = dma.hbm_to_vmem [thread:$0]  (!%p656_p13), %s99_s26, 1024, %s101_s28, %s88_s30  }
  0x20   : > { %p106_p2 = pnand %p423_p0, %p105_p1 }
  0x21   : > { %s677_s16 = sand.u32 (!%p106_p2), 1, %s569_s7  }
  0x22   : > { %109 = sbr.rel (%p106_p2) target bundleno = 206 (0xce), region = 24  ;;  %s424_s20 = sshll.u32 (!%p106_p2), %s677_s16, 6 }
  0x23   : > { %s112_s21 = scalar_lea.sflag (!%p106_p2), [#allocation3], %s677_s16  ;;  %s115_s22 = scalar_lea.vmem (!%p106_p2), [#allocation2], %s424_s20 }
  0x27   : > { %556 = dma.done.wait (%p634_p6), %s112_s21, 1024  }
  0x28   : > { %558 = vsyncadd (%p634_p6), %s112_s21, 4294966272  ;;  %v687_v0 = vld [vmem:[%s115_s22 + $0x10] sm:$0xff]  ;;  %v689_v1 = vld [vmem:[%s115_s22] sm:$0xff]  ;;  %s579_s23 = smov 127   ;;  %s580_s17 = smov 1   ;;  %v159_v16 = vlaneseq }
  0x29   : > { %147 = vrot.lane.b32.xlu1 %v687_v0, %s579_s23  ;;  %143 = vrot.lane.b32.xlu0 %v689_v1, %s579_s23  ;;  %v693_v2 = vld [vmem:[%s115_s22 + $0x20] sm:$0xff]  ;;  %v696_v3 = vld [vmem:[%s115_s22 + $0x18] sm:$0xff]  ;;  %v220_v14 = vmul.f32 %v687_v0, %v687_v0  ;;  %v218_v27 = vmul.f32 %v689_v1, %v689_v1  ;;  %s819_s24 = scalar_lea.vmem [#allocation5], %s424_s20  ;;  %s432_s25 = sshll.u32 %s612_s10, 6 }
  0x2a   : > { %151 = vrot.lane.b32.xlu2 %v693_v2, %s579_s23  ;;  %v698_v4 = vld [vmem:[%s115_s22 + $0x8] sm:$0xff]  ;;  %v705_v6 = vld [vmem:[%s115_s22 + $0x38] sm:$0xff]  ;;  %v707_v7 = vld [vmem:[%s115_s22 + $0x30] sm:$0xff]  ;;  %v222_v12 = vmul.f32 %v693_v2, %v693_v2  ;;  %v221_v13 = vmul.f32 %v696_v3, %v696_v3  ;;  %v743_v26 = vand.u32 127, %v159_v16  ;;  %v285_v59 = vmul.f32 0.2, %v696_v3  ;;  %s342_s27 = scalar_lea.hbm %s897_s1, %s432_s25 }
  0x2b   : > { %v700_v5 = vld [vmem:[%s115_s22 + $0x28] sm:$0xff]  ;;  %v219_v15 = vmul.f32 %v698_v4, %v698_v4  ;;  %v224_v20 = vmul.f32 %v707_v7, %v707_v7  ;;  %v228_v24 = vmul.f32 %v220_v14, %v687_v0  ;;  %v226_v39 = vmul.f32 %v218_v27, %v689_v1  ;;  %s344_s28 = sshll.u32 %s819_s24, 4  ;;  %s346_s29 = sshll.u32 %s342_s27, 4  ;;  %s345_s28 = int_to_ptr.vmem [resolvable:$true] %s344_s28  ;;  %s347_s29 = int_to_ptr.hbm [resolvable:$true] %s346_s29 }
  0x2c   : > { %v223_v19 = vmul.f32 %v700_v5, %v700_v5  ;;  %v230_v21 = vmul.f32 %v222_v12, %v693_v2  ;;  %v229_v22 = vmul.f32 %v221_v13, %v696_v3  ;;  %v197_v34 = vadd.s32 384, %v743_v26  ;;  %s331_s30 = scalar_lea.sflag [#allocation4], %s677_s16  ;;  %s525_s2 = sshra.s32 %s347_s29, 4  ;;  %s526_s2 = int_to_ptr.hbm [resolvable:$true] %s525_s2 }
  0x2d   : > { %v227_v25 = vmul.f32 %v219_v15, %v698_v4  ;;  %v232_v29 = vmul.f32 %v224_v20, %v707_v7  ;;  %v236_v32 = vmul.f32 0.33333334, %v228_v24  ;;  %v195_v35 = vadd.s32 128, %v743_v26  ;;  %s527_s3 = scalar_lea.hbm %s526_s2, 64  ;;  %s531_s11 = scalar_lea.hbm %s897_s1, 128 }
  0x2e   : > { %v231_v28 = vmul.f32 %v223_v19, %v700_v5  ;;  %v238_v30 = vmul.f32 0.33333334, %v230_v21  ;;  %v237_v31 = vmul.f32 0.33333334, %v229_v22  ;;  %vm161_vm0 = vcmp.lt.s32.totalorder %v743_v26, 127  ;;  %p528_p6 = scmp.ne.s32.totalorder %s526_s2, %s527_s3  ;;  %p532_p0 = scmp.lt.s32.totalorder %s526_s2, %s897_s1 }
  0x2f   : > { %v235_v33 = vmul.f32 0.33333334, %v227_v25  ;;  %v196_v38 = vadd.s32 256, %v743_v26  ;;  %v225_v40 = vmul.f32 %v705_v6, %v705_v6  ;;  %v240_v42 = vmul.f32 0.33333334, %v232_v29  ;;  %p533_p1 = scmp.lt.s32.totalorder %s531_s11, %s527_s3 }
  0x30   : > { %v239_v41 = vmul.f32 0.33333334, %v231_v28  ;;  %v246_v43 = vsub.f32 %v693_v2, %v238_v30  ;;  %v245_v44 = vsub.f32 %v696_v3, %v237_v31  ;;  %v244_v45 = vsub.f32 %v687_v0, %v236_v32  ;;  %p529_p9 = pnand %p528_p6, %p641_p11 }
  0x31   : > { %149 = vrot.lane.b32.xlu1 %v696_v3, %s579_s23  ;;  %145 = vrot.lane.b32.xlu0 %v698_v4, %s579_s23  ;;  %v243_v46 = vsub.f32 %v698_v4, %v235_v33  ;;  %v205_v47 = vand.u32 1, %v197_v34  ;;  %v203_v48 = vand.u32 1, %v195_v35  ;;  %v204_v53 = vand.u32 1, %v196_v38  ;;  %p534_p3 = por %p533_p1, %p532_p0 }
  0x32   : > { %153 = vrot.lane.b32.xlu2 %v700_v5, %s579_s23  ;;  %v769_v54 = vmul.f32 0.33333334, %v226_v39  ;;  %v233_v55 = vmul.f32 %v225_v40, %v705_v6  ;;  %v247_v56 = vsub.f32 %v700_v5, %v239_v41  ;;  %v248_v57 = vsub.f32 %v707_v7, %v240_v42  ;;  %p530_p13 = pneg %p529_p9 }
  0x33   : > { %vm186_vm1 = vcmp.lt.s32.totalorder %v743_v26, 1  ;;  %v283_v60 = vmul.f32 0.2, %v698_v4  ;;  %vm781_vm2 = vcmp.eq.s32.totalorder %v205_v47, 0  ;;  %vm785_vm3 = vcmp.eq.s32.totalorder %v203_v48, 0 }
  0x34   : > { %vm789_vm4 = vcmp.eq.s32.totalorder %v204_v53, 0  ;;  %v199_v28 = vadd.s32 640, %v743_v26  ;;  %v242_v33 = vsub.f32 %v689_v1, %v769_v54  ;;  %v241_v38 = vmul.f32 0.33333334, %v233_v55  ;;  %p535_p4 = pnand %p534_p3, %p530_p13 }
  0x35   : > { %v286_v48 = vmul.f32 0.2, %v693_v2  ;;  %v202_v14 = vand.u32 1, %v743_v26 }
  0x37   : > { %vm210_vm8 = vcmp.eq.s32.totalorder %v202_v14, 0 }
  0x39   : > { %157 = vrot.lane.b32.xlu1 %v705_v6, %s579_s23  ;;  %155 = vrot.lane.b32.xlu0 %v707_v7, %s579_s23 }
  0x3a   : > { %170 = vrot.lane.b32.xlu2 %v689_v1, %s580_s17 }
  0x41   : > { %174 = vrot.lane.b32.xlu1 %v687_v0, %s580_s17  ;;  %172 = vrot.lane.b32.xlu0 %v698_v4, %s580_s17  ;;  %v200_v4 = vadd.s32 768, %v743_v26 }
  0x42   : > { %176 = vrot.lane.b32.xlu2 %v696_v3, %s580_s17 }
  0x43   : > { %v208_v35 = vand.u32 1, %v200_v4 }
  0x45   : > { %vm827_vm5 = vcmp.eq.s32.totalorder %v208_v35, 0 }
  0x49   : > { %180 = vrot.lane.b32.xlu1 %v700_v5, %s580_s17  ;;  %178 = vrot.lane.b32.xlu0 %v693_v2, %s580_s17  ;;  %v249_v2 = vsub.f32 %v705_v6, %v241_v38 }
  0x4a   : > { %182 = vrot.lane.b32.xlu2 %v707_v7, %s580_s17 }
  0x51   : > { %184 = vrot.lane.b32.xlu0 %v705_v6, %s580_s17 }
  0x84   : > { %v152_v8 = vpop.permute.xlu2 %151 }
  0x8c   : > { %v719_v9 = vpop.permute.xlu2 %153 }
  0x8d   : > { %v164_v58 = vsel %vm161_vm0, %v152_v8, %v719_v9 }
  0x8e   : > { %v254_v19 = vsub.f32 %v246_v43, %v164_v58  ;;  %v201_v58 = vadd.s32 896, %v743_v26 }
  0x94   : > { %v739_v23 = vpop.permute.xlu2 %170 }
  0x9b   : > { %v148_v10 = vpop.permute.xlu1 %147  ;;  %v721_v11 = vpop.permute.xlu0 %143 }
  0x9c   : > { %v177_v52 = vpop.permute.xlu2 %176 }
  0xa3   : > { %v150_v17 = vpop.permute.xlu1 %149  ;;  %v731_v18 = vpop.permute.xlu0 %145 }
  0xa4   : > { %v165_v49 = vsel %vm161_vm0, %v150_v17, %v152_v8  ;;  %v166_v50 = vsel %vm161_vm0, %v148_v10, %v150_v17  ;;  %v167_v51 = vsel %vm161_vm0, %v731_v18, %v148_v10  ;;  %v284_v10 = vmul.f32 0.2, %v687_v0  ;;  %v183_v41 = vpop.permute.xlu2 %182 }
  0xa5   : > { %v252_v61 = vsub.f32 %v244_v45, %v166_v50  ;;  %v253_v62 = vsub.f32 %v245_v44, %v165_v49  ;;  %v251_v63 = vsub.f32 %v243_v46, %v167_v51  ;;  %v198_v17 = vadd.s32 512, %v743_v26 }
  0xa6   : > { %v207_v44 = vand.u32 1, %v199_v28  ;;  %v270_v45 = vmul.f32 20.0, %v254_v19  ;;  %v287_v49 = vmul.f32 0.2, %v700_v5  ;;  %v209_v8 = vand.u32 1, %v201_v58 }
  0xa7   : > { %v268_v24 = vmul.f32 20.0, %v252_v61  ;;  %v269_v25 = vmul.f32 20.0, %v253_v62  ;;  %v267_v27 = vmul.f32 20.0, %v251_v63  ;;  %v206_v43 = vand.u32 1, %v198_v17 }
  0xa8   : > { %vm215_vm7 = vcmp.eq.s32.totalorder %v207_v44, 0  ;;  %vm217_vm9 = vcmp.eq.s32.totalorder %v209_v8, 0 }
  0xa9   : > { %vm214_vm6 = vcmp.eq.s32.totalorder %v206_v43, 0 }
  0xab   : > { %v752_v36 = vpop.permute.xlu1 %157  ;;  %v156_v37 = vpop.permute.xlu0 %155 }
  0xac   : > { %v163_v29 = vsel %vm161_vm0, %v719_v9, %v156_v37  ;;  %v162_v34 = vsel %vm161_vm0, %v156_v37, %v752_v36  ;;  %v288_v37 = vmul.f32 0.2, %v707_v7  ;;  %v169_v63 = vsel %vm161_vm0, %v752_v36, %v721_v11 }
  0xad   : > { %v255_v42 = vsub.f32 %v247_v56, %v163_v29  ;;  %v256_v46 = vsub.f32 %v248_v57, %v162_v34  ;;  %v257_v4 = vsub.f32 %v249_v2, %v169_v63 }
  0xaf   : > { %v271_v57 = vmul.f32 20.0, %v255_v42  ;;  %v273_v17 = vmul.f32 20.0, %v257_v4 }
  0xb3   : > { %v175_v12 = vpop.permute.xlu1 %174  ;;  %v173_v3 = vpop.permute.xlu0 %172 }
  0xb4   : > { %v191_v15 = vsel %vm186_vm1, %v175_v12, %v177_v52  ;;  %v192_v0 = vsel %vm186_vm1, %v173_v3, %v175_v12  ;;  %v193_v16 = vsel %vm186_vm1, %v739_v23, %v173_v3 }
  0xb5   : > { %v277_v20 = vadd.f32 0.7, %v191_v15  ;;  %v275_v21 = vadd.f32 0.7, %v193_v16  ;;  %v276_v22 = vadd.f32 0.7, %v192_v0 }
  0xb6   : > { %v282_v0 = vmul.f32 0.2, %v689_v1 }
  0xb7   : > { %v293_v30 = vsub.f32 %v277_v20, %v285_v59  ;;  %v291_v31 = vsub.f32 %v275_v21, %v283_v60  ;;  %v292_v32 = vsub.f32 %v276_v22, %v284_v10  ;;  %v272_v59 = vmul.f32 20.0, %v256_v46 }
  0xb9   : > { %v317_v39 = vsel %vm781_vm2, %v269_v25, %v293_v30  ;;  %v315_v40 = vsel %vm785_vm3, %v267_v27, %v291_v31  ;;  %v316_v9 = vsel %vm789_vm4, %v268_v24, %v292_v32 }
  0xba   : > { %325 = vst [vmem:[%s819_s24 + $0x18] sm:$0xff] %v317_v39 }
  0xbb   : > { %323 = vst [vmem:[%s819_s24 + $0x8] sm:$0xff] %v315_v40  ;;  %v181_v47 = vpop.permute.xlu1 %180  ;;  %v179_v50 = vpop.permute.xlu0 %178 }
  0xbc   : > { %324 = vst [vmem:[%s819_s24 + $0x10] sm:$0xff] %v316_v9  ;;  %v188_v53 = vsel %vm186_vm1, %v181_v47, %v183_v41  ;;  %v189_v7 = vsel %vm186_vm1, %v179_v50, %v181_v47  ;;  %v190_v54 = vsel %vm186_vm1, %v177_v52, %v179_v50  ;;  %v168_v52 = vsel %vm161_vm0, %v721_v11, %v731_v18 }
  0xbd   : > { %v280_v55 = vadd.f32 0.7, %v188_v53  ;;  %v278_v5 = vadd.f32 0.7, %v190_v54  ;;  %v279_v56 = vadd.f32 0.7, %v189_v7  ;;  %v250_v3 = vsub.f32 %v242_v33, %v168_v52 }
  0xbe   : > { %v289_v18 = vmul.f32 0.2, %v705_v6 }
  0xbf   : > { %v296_v60 = vsub.f32 %v280_v55, %v288_v37  ;;  %v294_v61 = vsub.f32 %v278_v5, %v286_v48  ;;  %v295_v62 = vsub.f32 %v279_v56, %v287_v49  ;;  %v266_v1 = vmul.f32 20.0, %v250_v3 }
  0xc1   : > { %v320_v10 = vsel %vm827_vm5, %v272_v59, %v296_v60  ;;  %v318_v12 = vsel %vm214_vm6, %v270_v45, %v294_v61  ;;  %v319_v13 = vsel %vm215_vm7, %v271_v57, %v295_v62 }
  0xc2   : > { %328 = vst [vmem:[%s819_s24 + $0x30] sm:$0xff] %v320_v10 }
  0xc3   : > { %326 = vst [vmem:[%s819_s24 + $0x20] sm:$0xff] %v318_v12  ;;  %v185_v15 = vpop.permute.xlu0 %184 }
  0xc4   : > { %327 = vst [vmem:[%s819_s24 + $0x28] sm:$0xff] %v319_v13  ;;  %v187_v11 = vsel %vm186_vm1, %v183_v41, %v185_v15  ;;  %v194_v36 = vsel %vm186_vm1, %v185_v15, %v739_v23 }
  0xc5   : > { %v274_v16 = vadd.f32 0.7, %v194_v36  ;;  %v281_v6 = vadd.f32 0.7, %v187_v11 }
  0xc7   : > { %v290_v19 = vsub.f32 %v274_v16, %v282_v0  ;;  %v297_v20 = vsub.f32 %v281_v6, %v289_v18 }
  0xc9   : > { %v314_v21 = vsel %vm210_vm8, %v266_v1, %v290_v19  ;;  %v321_v22 = vsel %vm217_vm9, %v273_v17, %v297_v20 }
  0xca   : > { %322 = vst [vmem:[%s819_s24] sm:$0xff] %v314_v21 }
  0xcb   : > { %329 = vst [vmem:[%s819_s24 + $0x38] sm:$0xff] %v321_v22 }
  0xcc   : > { %538 = shalt.err (!%p535_p4)
}
  0xcd   : > { %435 = dma.vmem_to_hbm [thread:$0]  (%p641_p11), %s345_s28, 1024, %s347_s29, %s331_s30  }
  0xce PF: > { %s358_s16 = sand.u32 1, %s565_s6   ;;  %p911_p7 = scmp.ge.s32.totalorder %s577_s9, 2 }
  0xcf   : > { %s359_s20 = scalar_lea.sflag [#allocation4], %s358_s16 }
  0xd0   : > { %p442_p5 = pnand %p911_p7, %p645_p12 }
  0xd2   : > { %p443_p8 = pneg %p442_p5 }
  0xd4   : > { %560 = dma.done.wait (%p443_p8), %s359_s20, 1024  }
  0xd5   : > { %562 = vsyncadd (%p443_p8), %s359_s20, 4294966272  ;;  %p14_p10 = scmp.ge.s32.totalorder %s616_s12, 4   ;;  %s912_s6 = smov %s569_s7 }
  0xd6   : > { %s913_s7 = smov %s573_s8  ;;  %s914_s8 = smov %s628_s15 }
  0xd7   : > { %s915_s9 = smov %s616_s12  ;;  %16 = sbr.rel (!%p14_p10) target bundleno = 5 (0x5), region = 69 }
  0xdc   :  { %365 = vsyncpa [#allocation3], 1 }
  0xdd   :  { %367 = vsyncpa [#allocation3 + $0x1], 1 }
  0xde   :  { %368 = vsyncpa [#allocation4], 1 }
  0xdf   :  { %370 = vsyncpa [#allocation4 + $0x1], 1 }

</bundles_post_ra>
